<compile_context>
chip_gen: v5e
topology: v5e:2x2
jax: 0.10.0
libtpu: 0.0.40
codegen_flags: <defaults>
</compile_context>

<pallas_src>
import jax
import jax.numpy as jnp
from jax.experimental import pallas as pl
from jax.experimental.pallas import tpu as pltpu


def _round_up(x, m):
    return ((x + m - 1) // m) * m


def qdst_head_kernel(ids_ref,            # (Bp,)  i32  scalar prefetch: [CLS] token id per row
                     emb_hbm,            # (V, H) f32  embedding table, stays in HBM (pl.ANY)
                     wp_ref, bp_ref,     # pooler dense:  (H, H) bf16 / (1, H) f32
                     w1_ref, b1_ref,     # hidden_layer:  (H, H) bf16 / (1, H) f32
                     w2_ref, b2_ref,     # final_layer:   (H, 128) bf16 / (1, 128) f32 (lane-padded)
                     out_ref,            # (TM, 128) f32 lane-dense logits (column 0 is real)
                     cls_buf,            # scratch: (TM, H) f32 VMEM gather buffer
                     gather_sem):        # scratch: (1,) DMA semaphore
    i = pl.program_id(0)
    tm = cls_buf.shape[0]

    # ---- fused [CLS] embedding gather: DMA tm rows of the HBM table into VMEM.
    # All issues + waits happen inside this grid step, so the pattern stays
    # correct when the grid is sharded across v7x's two TensorCores.
    @pl.loop(0, tm)
    def _issue(r):
        row = ids_ref[i * tm + r]
        pltpu.make_async_copy(emb_hbm.at[pl.ds(row, 1)],
                              cls_buf.at[pl.ds(r, 1)],
                              gather_sem.at[0]).start()

    @pl.loop(0, tm)
    def _wait(r):
        # Same-sized descriptor per row; N issues + N waits on one sem match up.
        pltpu.make_async_copy(emb_hbm.at[pl.ds(0, 1)],
                              cls_buf.at[pl.ds(r, 1)],
                              gather_sem.at[0]).wait()

    cls = cls_buf[...].astype(jnp.bfloat16)          # f32 rows -> bf16 MXU operand

    # Longformer pooler: pooled = tanh(cls @ Wp + bp)  == base(...)[1]
    # bf16 MXU operands, f32 accumulate; bias-add / tanh in f32 (v5e has no bf16 VPU/EUP).
    pooled = jnp.tanh(
        jnp.dot(cls, wp_ref[...], preferred_element_type=jnp.float32)
        + bp_ref[...])

    # dropout(emb) -> identity (eval). hidden = tanh(hidden_layer(emb))
    hidden = jnp.tanh(
        jnp.dot(pooled.astype(jnp.bfloat16), w1_ref[...],
                preferred_element_type=jnp.float32)
        + b1_ref[...])

    # dropout(hidden) -> identity (eval). logit = final_layer(hidden)
    # w2 is lane-padded to 128 columns so the output store is an unmasked vst.
    out_ref[...] = (jnp.dot(hidden.astype(jnp.bfloat16), w2_ref[...],
                            preferred_element_type=jnp.float32)
                    + b2_ref[...])


def qdst_forward(input_ids, tok_mask, sent_locs, sent_mask, params, *,
                 block_m=512):
    """Single fused Pallas call: CLS gather + pooler + QDST head."""
    del tok_mask, sent_locs, sent_mask  # unused by the PyTorch forward's output
    B = input_ids.shape[0]
    word_emb = params["word_emb"]                     # (V, H) f32, stays in HBM
    V, H = word_emb.shape
    # NOTE: production Longformer H (=768) is a multiple of 128; the toy H here
    # relies on "block dim == full array dim" so the (8,128) rule is satisfied.

    # Batch tile: multiple of 16 rows (a bf16 vreg packs [16,128]); for larger
    # batches pick a tile that gives >= 2 grid steps so both v7x TensorCores
    # get work under dimension_semantics=("parallel",).
    b16 = _round_up(B, 16)
    if b16 <= 256:
        tm = b16                                       # small batch: single tile
    else:
        tm = min(block_m, _round_up(-(-B // 2), 256))  # >= 2 grid steps
    bp_rows = _round_up(B, tm)

    # [CLS] token ids, padded with 0 (a valid row) for the padded batch rows;
    # the padded rows' garbage logits are sliced off below.
    cls_ids = input_ids[:, 0].astype(jnp.int32)
    if bp_rows != B:
        cls_ids = jnp.pad(cls_ids, (0, bp_rows - B))

    grid = (bp_rows // tm,)

    def run(weight_mode):
        def wspec(shape):
            # Grid-invariant operands: constant index_map, optionally single-buffered.
            if weight_mode is None:
                return pl.BlockSpec(shape, lambda i, ids: (0, 0))
            return pl.BlockSpec(shape, lambda i, ids: (0, 0),
                                pipeline_mode=weight_mode)

        return pl.pallas_call(
            qdst_head_kernel,
            out_shape=jax.ShapeDtypeStruct((bp_rows, 128), jnp.float32),
            grid_spec=pltpu.PrefetchScalarGridSpec(
                num_scalar_prefetch=1,                 # cls_ids -> SMEM
                grid=grid,
                in_specs=[
                    pl.BlockSpec(memory_space=pl.ANY),  # word_emb stays in HBM
                    wspec((H, H)),                      # wp   (VMEM-resident)
                    wspec((1, H)),                      # bp
                    wspec((H, H)),                      # w1   (VMEM-resident)
                    wspec((1, H)),                      # b1
                    wspec((H, 128)),                    # w2   (lane-padded)
                    wspec((1, 128)),                    # b2   (lane-padded)
                ],
                out_specs=pl.BlockSpec((tm, 128), lambda i, ids: (i, 0)),
                scratch_shapes=[
                    pltpu.VMEM((tm, H), jnp.float32),   # gathered CLS rows
                    pltpu.SemaphoreType.DMA((1,)),
                ],
            ),
            compiler_params=pltpu.CompilerParams(
                dimension_semantics=("parallel",),
                vmem_limit_bytes=32 * 1024 * 1024,
            ),
        )(cls_ids, word_emb, params["wp"], params["bp"], params["w1"],
          params["b1"], params["w2_pad"], params["b2_pad"])

    try:
        out = run(pl.Buffered(1))   # single-buffer the grid-invariant weights
    except Exception:               # JAX without pipeline_mode support on TPU
        out = run(None)

    # Slice back to the real batch and the single logit column.
    return out[:B, 0:1]


def init_params(key, vocab_size, hidden_size):
    """Inference-ready params: bf16 weights and lane-padding are built ONCE here,
    not per forward call."""
    ks = jax.random.split(key, 6)
    s = 0.02
    H = hidden_size
    w2 = s * jax.random.normal(ks[4], (H, 1), jnp.float32)
    b2 = 0.01 * jax.random.normal(ks[5], (1, 1), jnp.float32)
    return {
        # Embedding table stays f32: the kernel row-gathers it by DMA and f32
        # rows are 32-bit sublane-granular (bf16 rows would need u32 packing).
        "word_emb": s * jax.random.normal(ks[0], (vocab_size, H), jnp.float32),
        # pooler dense (part of LongformerModel's pooled output), stored (in, out)
        "wp": (s * jax.random.normal(ks[1], (H, H), jnp.float32)).astype(jnp.bfloat16),
        "bp": jnp.zeros((1, H), jnp.float32),
        # hidden_layer: Linear(H, H, bias=True)
        "w1": (s * jax.random.normal(ks[2], (H, H), jnp.float32)).astype(jnp.bfloat16),
        "b1": 0.01 * jax.random.normal(ks[3], (1, H), jnp.float32),
        # final_layer: Linear(H, 1, bias=True), lane-padded to 128 output columns
        # (columns 1..127 are zero) so the kernel's output store is unmasked.
        "w2_pad": jnp.pad(w2, ((0, 0), (0, 127))).astype(jnp.bfloat16),
        "b2_pad": jnp.pad(b2, ((0, 0), (0, 127))),
        # unpadded copies kept only for the pure-JAX reference checks below
        "w2": w2.astype(jnp.bfloat16),
        "b2": b2,
    }


def _reference(input_ids, params):
    """Pure-JAX reference mirroring the kernel's mixed-precision path."""
    cls = jnp.take(params["word_emb"], input_ids[:, 0], axis=0)   # (B, H) f32
    cls_bf = cls.astype(jnp.bfloat16)
    pooled = jnp.tanh(
        jnp.dot(cls_bf, params["wp"], preferred_element_type=jnp.float32)
        + params["bp"])
    hidden = jnp.tanh(
        jnp.dot(pooled.astype(jnp.bfloat16), params["w1"],
                preferred_element_type=jnp.float32) + params["b1"])
    return (jnp.dot(hidden.astype(jnp.bfloat16), params["w2"],
                    preferred_element_type=jnp.float32) + params["b2"])


def _reference_f32(input_ids, params):
    """Full-f32 reference (loose check against the bf16-weight kernel)."""
    cls = jnp.take(params["word_emb"], input_ids[:, 0], axis=0)
    pooled = jnp.tanh(cls @ params["wp"].astype(jnp.float32) + params["bp"])
    hidden = jnp.tanh(pooled @ params["w1"].astype(jnp.float32) + params["b1"])
    return hidden @ params["w2"].astype(jnp.float32) + params["b2"]


if __name__ == "__main__":
    B, S, H, V = 2, 8, 32, 100          # batch, seq_len, hidden, vocab
    SENT = 4                             # sent_num (unused by forward output)

    key = jax.random.PRNGKey(0)
    k_ids, k_params = jax.random.split(key)

    input_ids = jax.random.randint(k_ids, (B, S), 0, V, dtype=jnp.int32)
    tok_mask = jnp.ones((B, S), jnp.float32)
    sent_locs = jnp.zeros((B, SENT), jnp.int32)
    sent_mask = jnp.ones((B, SENT, 1), jnp.float32)

    params = init_params(k_params, V, H)

    logit = qdst_forward(input_ids, tok_mask, sent_locs, sent_mask, params)
    logit = jax.block_until_ready(logit)

    assert logit.shape == (B, 1)
    ref_bf16 = _reference(input_ids, params)
    assert jnp.allclose(logit, ref_bf16, atol=1e-4, rtol=1e-4), (logit, ref_bf16)
    ref_f32 = _reference_f32(input_ids, params)
    assert jnp.allclose(logit, ref_f32, atol=5e-2, rtol=5e-2)

    print("KERNEL_OK")
</pallas_src>

<mosaic_0001>
module attributes {stable_mosaic.version = 11 : i64} {
  func.func @qdst_head_kernel(%arg0: i32, %arg1: memref<16xi32, #tpu.memory_space<smem>>, %arg2: memref<100x32xf32, #tpu.memory_space<any>>, %arg3: memref<32x32xbf16, #tpu.memory_space<vmem>>, %arg4: memref<1x32xf32, #tpu.memory_space<vmem>>, %arg5: memref<32x32xbf16, #tpu.memory_space<vmem>>, %arg6: memref<1x32xf32, #tpu.memory_space<vmem>>, %arg7: memref<32x128xbf16, #tpu.memory_space<vmem>>, %arg8: memref<1x128xf32, #tpu.memory_space<vmem>>, %arg9: memref<16x128xf32, #tpu.memory_space<vmem>>, %arg10: memref<16x32xf32, #tpu.memory_space<vmem>>, %arg11: memref<1x!tpu.dma_semaphore, #tpu.memory_space<semaphore_mem>>) attributes {dimension_semantics = [#tpu.dimension_semantics<parallel>], iteration_bounds = array<i64: 1>, scalar_prefetch = 1 : i64, scratch_operands = 2 : i64, tpu.core_type = #tpu.core_type<tc>, window_params = [{}, {pipeline_mode = #tpu.pipeline_mode<synchronous>, transform_indices = @transform_1, window_bounds = array<i64: 32, 32>}, {pipeline_mode = #tpu.pipeline_mode<synchronous>, transform_indices = @transform_2, window_bounds = array<i64: 1, 32>}, {pipeline_mode = #tpu.pipeline_mode<synchronous>, transform_indices = @transform_3, window_bounds = array<i64: 32, 32>}, {pipeline_mode = #tpu.pipeline_mode<synchronous>, transform_indices = @transform_4, window_bounds = array<i64: 1, 32>}, {pipeline_mode = #tpu.pipeline_mode<synchronous>, transform_indices = @transform_5, window_bounds = array<i64: 32, 128>}, {pipeline_mode = #tpu.pipeline_mode<synchronous>, transform_indices = @transform_6, window_bounds = array<i64: 1, 128>}, {transform_indices = @transform_7, window_bounds = array<i64: 16, 128>}]} {
    %c0_i32 = arith.constant 0 : i32
    %c16_i32 = arith.constant 16 : i32
    %0 = arith.addi %c0_i32, %c16_i32 : i32
    %c1_i32 = arith.constant 1 : i32
    scf.for %arg12 = %c0_i32 to %0 step %c1_i32  : i32 {
      %c1_i32_22 = arith.constant 1 : i32
      %24 = arith.muli %arg12, %c1_i32_22 : i32
      %c0_i32_23 = arith.constant 0 : i32
      %25 = arith.addi %c0_i32_23, %24 : i32
      %c16_i32_24 = arith.constant 16 : i32
      %26 = arith.muli %arg0, %c16_i32_24 : i32
      %27 = arith.addi %26, %25 : i32
      %28 = arith.index_cast %27 : i32 to index
      %29 = memref.load %arg1[%28] : memref<16xi32, #tpu.memory_space<smem>>
      %c0_i32_25 = arith.constant 0 : i32
      %c0_i32_26 = arith.constant 0 : i32
      %30 = tpu.memref_slice %arg2[%29, %c0_i32_26] : memref<100x32xf32, #tpu.memory_space<any>> -> memref<1x32xf32, #tpu.memory_space<any>>
      %c0_i32_27 = arith.constant 0 : i32
      %31 = tpu.memref_slice %arg10[%25, %c0_i32_27] : memref<16x32xf32, #tpu.memory_space<vmem>> -> memref<1x32xf32, #tpu.memory_space<vmem>>
      %32 = tpu.memref_slice %arg11[%c0_i32_25] : memref<1x!tpu.dma_semaphore, #tpu.memory_space<semaphore_mem>> -> memref<1x!tpu.dma_semaphore, #tpu.memory_space<semaphore_mem>>
      %33 = tpu.memref_squeeze %32 : memref<1x!tpu.dma_semaphore, #tpu.memory_space<semaphore_mem>> -> memref<!tpu.dma_semaphore, #tpu.memory_space<semaphore_mem>>
      tpu.enqueue_dma source(%30 : memref<1x32xf32, #tpu.memory_space<any>>) target(%31 : memref<1x32xf32, #tpu.memory_space<vmem>>) target_semaphore(%33 : memref<!tpu.dma_semaphore, #tpu.memory_space<semaphore_mem>>)
    }
    %c16_i32_0 = arith.constant 16 : i32
    %c0_i32_1 = arith.constant 0 : i32
    %c16_i32_2 = arith.constant 16 : i32
    %1 = arith.addi %c0_i32_1, %c16_i32_2 : i32
    %c1_i32_3 = arith.constant 1 : i32
    scf.for %arg12 = %c0_i32_1 to %1 step %c1_i32_3  : i32 {
      %c1_i32_22 = arith.constant 1 : i32
      %24 = arith.muli %arg12, %c1_i32_22 : i32
      %c0_i32_23 = arith.constant 0 : i32
      %25 = arith.addi %c0_i32_23, %24 : i32
      %c0_i32_24 = arith.constant 0 : i32
      %c0_i32_25 = arith.constant 0 : i32
      %c0_i32_26 = arith.constant 0 : i32
      %26 = tpu.memref_slice %arg2[%c0_i32_25, %c0_i32_26] : memref<100x32xf32, #tpu.memory_space<any>> -> memref<1x32xf32, #tpu.memory_space<any>>
      %c0_i32_27 = arith.constant 0 : i32
      %27 = tpu.memref_slice %arg10[%25, %c0_i32_27] : memref<16x32xf32, #tpu.memory_space<vmem>> -> memref<1x32xf32, #tpu.memory_space<vmem>>
      %28 = tpu.memref_slice %arg11[%c0_i32_24] : memref<1x!tpu.dma_semaphore, #tpu.memory_space<semaphore_mem>> -> memref<1x!tpu.dma_semaphore, #tpu.memory_space<semaphore_mem>>
      %29 = tpu.memref_squeeze %28 : memref<1x!tpu.dma_semaphore, #tpu.memory_space<semaphore_mem>> -> memref<!tpu.dma_semaphore, #tpu.memory_space<semaphore_mem>>
      tpu.wait_dma2 semaphore(%29 : memref<!tpu.dma_semaphore, #tpu.memory_space<semaphore_mem>>) src(%26 : memref<1x32xf32, #tpu.memory_space<any>>) dst(%27 : memref<1x32xf32, #tpu.memory_space<vmem>>)
    }
    %c16_i32_4 = arith.constant 16 : i32
    %c0 = arith.constant 0 : index
    %c0_5 = arith.constant 0 : index
    %2 = vector.load %arg10[%c0, %c0_5] : memref<16x32xf32, #tpu.memory_space<vmem>>, vector<16x32xf32>
    %3 = arith.truncf %2 : vector<16x32xf32> to vector<16x32xbf16>
    %c0_6 = arith.constant 0 : index
    %c0_7 = arith.constant 0 : index
    %4 = vector.load %arg3[%c0_6, %c0_7] : memref<32x32xbf16, #tpu.memory_space<vmem>>, vector<32x32xbf16>
    %cst = arith.constant dense<0.000000e+00> : vector<16x32xf32>
    %5 = tpu.matmul %3, %4, %cst {dimension_numbers = #tpu.dot_dimension_numbers<[1], [0], [0], [1], [0, 0, 1, 1], [], []>} : vector<16x32xbf16>, vector<32x32xbf16>, vector<16x32xf32> -> vector<16x32xf32>
    %c0_8 = arith.constant 0 : index
    %c0_9 = arith.constant 0 : index
    %6 = vector.load %arg4[%c0_8, %c0_9] : memref<1x32xf32, #tpu.memory_space<vmem>>, vector<1x32xf32>
    %7 = vector.broadcast %6 : vector<1x32xf32> to vector<16x32xf32>
    %8 = arith.addf %5, %7 : vector<16x32xf32>
    %9 = math.tanh %8 : vector<16x32xf32>
    %10 = arith.truncf %9 : vector<16x32xf32> to vector<16x32xbf16>
    %c0_10 = arith.constant 0 : index
    %c0_11 = arith.constant 0 : index
    %11 = vector.load %arg5[%c0_10, %c0_11] : memref<32x32xbf16, #tpu.memory_space<vmem>>, vector<32x32xbf16>
    %cst_12 = arith.constant dense<0.000000e+00> : vector<16x32xf32>
    %12 = tpu.matmul %10, %11, %cst_12 {dimension_numbers = #tpu.dot_dimension_numbers<[1], [0], [0], [1], [0, 0, 1, 1], [], []>} : vector<16x32xbf16>, vector<32x32xbf16>, vector<16x32xf32> -> vector<16x32xf32>
    %c0_13 = arith.constant 0 : index
    %c0_14 = arith.constant 0 : index
    %13 = vector.load %arg6[%c0_13, %c0_14] : memref<1x32xf32, #tpu.memory_space<vmem>>, vector<1x32xf32>
    %14 = vector.broadcast %13 : vector<1x32xf32> to vector<16x32xf32>
    %15 = arith.addf %12, %14 : vector<16x32xf32>
    %16 = math.tanh %15 : vector<16x32xf32>
    %17 = arith.truncf %16 : vector<16x32xf32> to vector<16x32xbf16>
    %c0_15 = arith.constant 0 : index
    %c0_16 = arith.constant 0 : index
    %18 = vector.load %arg7[%c0_15, %c0_16] : memref<32x128xbf16, #tpu.memory_space<vmem>>, vector<32x128xbf16>
    %cst_17 = arith.constant dense<0.000000e+00> : vector<16x128xf32>
    %19 = tpu.matmul %17, %18, %cst_17 {dimension_numbers = #tpu.dot_dimension_numbers<[1], [0], [0], [1], [0, 0, 1, 1], [], []>} : vector<16x32xbf16>, vector<32x128xbf16>, vector<16x128xf32> -> vector<16x128xf32>
    %c0_18 = arith.constant 0 : index
    %c0_19 = arith.constant 0 : index
    %20 = vector.load %arg8[%c0_18, %c0_19] : memref<1x128xf32, #tpu.memory_space<vmem>>, vector<1x128xf32>
    %21 = vector.broadcast %20 : vector<1x128xf32> to vector<16x128xf32>
    %22 = arith.addf %19, %21 : vector<16x128xf32>
    %c0_20 = arith.constant 0 : index
    %c0_21 = arith.constant 0 : index
    %23 = vector.load %arg9[%c0_20, %c0_21] : memref<16x128xf32, #tpu.memory_space<vmem>>, vector<16x128xf32>
    tpu.vector_store %arg9[%c0_20, %c0_21], %22 {strides = array<i32>} : memref<16x128xf32, #tpu.memory_space<vmem>>, vector<16x128xf32>,
    return
  }
  func.func @transform_1(%arg0: i32, %arg1: memref<16xi32, #tpu.memory_space<smem>>) -> (i32, i32) {
    %c0_i32 = arith.constant 0 : i32
    %c0_i32_0 = arith.constant 0 : i32
    %c0_i32_1 = arith.constant 0 : i32
    return %c0_i32, %c0_i32_0 : i32, i32
  }
  func.func @transform_2(%arg0: i32, %arg1: memref<16xi32, #tpu.memory_space<smem>>) -> (i32, i32) {
    %c0_i32 = arith.constant 0 : i32
    %c0_i32_0 = arith.constant 0 : i32
    %c0_i32_1 = arith.constant 0 : i32
    return %c0_i32, %c0_i32_0 : i32, i32
  }
  func.func @transform_3(%arg0: i32, %arg1: memref<16xi32, #tpu.memory_space<smem>>) -> (i32, i32) {
    %c0_i32 = arith.constant 0 : i32
    %c0_i32_0 = arith.constant 0 : i32
    %c0_i32_1 = arith.constant 0 : i32
    return %c0_i32, %c0_i32_0 : i32, i32
  }
  func.func @transform_4(%arg0: i32, %arg1: memref<16xi32, #tpu.memory_space<smem>>) -> (i32, i32) {
    %c0_i32 = arith.constant 0 : i32
    %c0_i32_0 = arith.constant 0 : i32
    %c0_i32_1 = arith.constant 0 : i32
    return %c0_i32, %c0_i32_0 : i32, i32
  }
  func.func @transform_5(%arg0: i32, %arg1: memref<16xi32, #tpu.memory_space<smem>>) -> (i32, i32) {
    %c0_i32 = arith.constant 0 : i32
    %c0_i32_0 = arith.constant 0 : i32
    %c0_i32_1 = arith.constant 0 : i32
    return %c0_i32, %c0_i32_0 : i32, i32
  }
  func.func @transform_6(%arg0: i32, %arg1: memref<16xi32, #tpu.memory_space<smem>>) -> (i32, i32) {
    %c0_i32 = arith.constant 0 : i32
    %c0_i32_0 = arith.constant 0 : i32
    %c0_i32_1 = arith.constant 0 : i32
    return %c0_i32, %c0_i32_0 : i32, i32
  }
  func.func @transform_7(%arg0: i32, %arg1: memref<16xi32, #tpu.memory_space<smem>>) -> (i32, i32) {
    %c0_i32 = arith.constant 0 : i32
    %c0_i32_0 = arith.constant 0 : i32
    return %arg0, %c0_i32 : i32, i32
  }
}

module attributes {stable_mosaic.version = 11 : i64} {
  func.func @qdst_head_kernel(%arg0: i32, %arg1: memref<16xi32, #tpu.memory_space<smem>>, %arg2: memref<100x32xf32, #tpu.memory_space<any>>, %arg3: memref<32x32xbf16, #tpu.memory_space<vmem>>, %arg4: memref<1x32xf32, #tpu.memory_space<vmem>>, %arg5: memref<32x32xbf16, #tpu.memory_space<vmem>>, %arg6: memref<1x32xf32, #tpu.memory_space<vmem>>, %arg7: memref<32x128xbf16, #tpu.memory_space<vmem>>, %arg8: memref<1x128xf32, #tpu.memory_space<vmem>>, %arg9: memref<16x128xf32, #tpu.memory_space<vmem>>, %arg10: memref<16x32xf32, #tpu.memory_space<vmem>>, %arg11: memref<1x!tpu.dma_semaphore, #tpu.memory_space<semaphore_mem>>) attributes {dimension_semantics = [#tpu.dimension_semantics<parallel>], iteration_bounds = array<i64: 1>, scalar_prefetch = 1 : i64, scratch_operands = 2 : i64, tpu.core_type = #tpu.core_type<tc>, window_params = [{}, {pipeline_mode = #tpu.pipeline_mode<synchronous>, transform_indices = @transform_1, window_bounds = array<i64: 32, 32>}, {pipeline_mode = #tpu.pipeline_mode<synchronous>, transform_indices = @transform_2, window_bounds = array<i64: 1, 32>}, {pipeline_mode = #tpu.pipeline_mode<synchronous>, transform_indices = @transform_3, window_bounds = array<i64: 32, 32>}, {pipeline_mode = #tpu.pipeline_mode<synchronous>, transform_indices = @transform_4, window_bounds = array<i64: 1, 32>}, {pipeline_mode = #tpu.pipeline_mode<synchronous>, transform_indices = @transform_5, window_bounds = array<i64: 32, 128>}, {pipeline_mode = #tpu.pipeline_mode<synchronous>, transform_indices = @transform_6, window_bounds = array<i64: 1, 128>}, {transform_indices = @transform_7, window_bounds = array<i64: 16, 128>}]} {
    %c0_i32 = arith.constant 0 : i32
    %c16_i32 = arith.constant 16 : i32
    %0 = arith.addi %c0_i32, %c16_i32 : i32
    %c1_i32 = arith.constant 1 : i32
    scf.for %arg12 = %c0_i32 to %0 step %c1_i32  : i32 {
      %c1_i32_22 = arith.constant 1 : i32
      %24 = arith.muli %arg12, %c1_i32_22 : i32
      %c0_i32_23 = arith.constant 0 : i32
      %25 = arith.addi %c0_i32_23, %24 : i32
      %c16_i32_24 = arith.constant 16 : i32
      %26 = arith.muli %arg0, %c16_i32_24 : i32
      %27 = arith.addi %26, %25 : i32
      %28 = arith.index_cast %27 : i32 to index
      %29 = memref.load %arg1[%28] : memref<16xi32, #tpu.memory_space<smem>>
      %c0_i32_25 = arith.constant 0 : i32
      %c0_i32_26 = arith.constant 0 : i32
      %30 = tpu.memref_slice %arg2[%29, %c0_i32_26] : memref<100x32xf32, #tpu.memory_space<any>> -> memref<1x32xf32, #tpu.memory_space<any>>
      %c0_i32_27 = arith.constant 0 : i32
      %31 = tpu.memref_slice %arg10[%25, %c0_i32_27] : memref<16x32xf32, #tpu.memory_space<vmem>> -> memref<1x32xf32, #tpu.memory_space<vmem>>
      %32 = tpu.memref_slice %arg11[%c0_i32_25] : memref<1x!tpu.dma_semaphore, #tpu.memory_space<semaphore_mem>> -> memref<1x!tpu.dma_semaphore, #tpu.memory_space<semaphore_mem>>
      %33 = tpu.memref_squeeze %32 : memref<1x!tpu.dma_semaphore, #tpu.memory_space<semaphore_mem>> -> memref<!tpu.dma_semaphore, #tpu.memory_space<semaphore_mem>>
      tpu.enqueue_dma source(%30 : memref<1x32xf32, #tpu.memory_space<any>>) target(%31 : memref<1x32xf32, #tpu.memory_space<vmem>>) target_semaphore(%33 : memref<!tpu.dma_semaphore, #tpu.memory_space<semaphore_mem>>)
    }
    %c16_i32_0 = arith.constant 16 : i32
    %c0_i32_1 = arith.constant 0 : i32
    %c16_i32_2 = arith.constant 16 : i32
    %1 = arith.addi %c0_i32_1, %c16_i32_2 : i32
    %c1_i32_3 = arith.constant 1 : i32
    scf.for %arg12 = %c0_i32_1 to %1 step %c1_i32_3  : i32 {
      %c1_i32_22 = arith.constant 1 : i32
      %24 = arith.muli %arg12, %c1_i32_22 : i32
      %c0_i32_23 = arith.constant 0 : i32
      %25 = arith.addi %c0_i32_23, %24 : i32
      %c0_i32_24 = arith.constant 0 : i32
      %c0_i32_25 = arith.constant 0 : i32
      %c0_i32_26 = arith.constant 0 : i32
      %26 = tpu.memref_slice %arg2[%c0_i32_25, %c0_i32_26] : memref<100x32xf32, #tpu.memory_space<any>> -> memref<1x32xf32, #tpu.memory_space<any>>
      %c0_i32_27 = arith.constant 0 : i32
      %27 = tpu.memref_slice %arg10[%25, %c0_i32_27] : memref<16x32xf32, #tpu.memory_space<vmem>> -> memref<1x32xf32, #tpu.memory_space<vmem>>
      %28 = tpu.memref_slice %arg11[%c0_i32_24] : memref<1x!tpu.dma_semaphore, #tpu.memory_space<semaphore_mem>> -> memref<1x!tpu.dma_semaphore, #tpu.memory_space<semaphore_mem>>
      %29 = tpu.memref_squeeze %28 : memref<1x!tpu.dma_semaphore, #tpu.memory_space<semaphore_mem>> -> memref<!tpu.dma_semaphore, #tpu.memory_space<semaphore_mem>>
      tpu.wait_dma2 semaphore(%29 : memref<!tpu.dma_semaphore, #tpu.memory_space<semaphore_mem>>) src(%26 : memref<1x32xf32, #tpu.memory_space<any>>) dst(%27 : memref<1x32xf32, #tpu.memory_space<vmem>>)
    }
    %c16_i32_4 = arith.constant 16 : i32
    %c0 = arith.constant 0 : index
    %c0_5 = arith.constant 0 : index
    %2 = vector.load %arg10[%c0, %c0_5] : memref<16x32xf32, #tpu.memory_space<vmem>>, vector<16x32xf32>
    %3 = arith.truncf %2 : vector<16x32xf32> to vector<16x32xbf16>
    %c0_6 = arith.constant 0 : index
    %c0_7 = arith.constant 0 : index
    %4 = vector.load %arg3[%c0_6, %c0_7] : memref<32x32xbf16, #tpu.memory_space<vmem>>, vector<32x32xbf16>
    %cst = arith.constant dense<0.000000e+00> : vector<16x32xf32>
    %5 = tpu.matmul %3, %4, %cst {dimension_numbers = #tpu.dot_dimension_numbers<[1], [0], [0], [1], [0, 0, 1, 1], [], []>} : vector<16x32xbf16>, vector<32x32xbf16>, vector<16x32xf32> -> vector<16x32xf32>
    %c0_8 = arith.constant 0 : index
    %c0_9 = arith.constant 0 : index
    %6 = vector.load %arg4[%c0_8, %c0_9] : memref<1x32xf32, #tpu.memory_space<vmem>>, vector<1x32xf32>
    %7 = vector.broadcast %6 : vector<1x32xf32> to vector<16x32xf32>
    %8 = arith.addf %5, %7 : vector<16x32xf32>
    %9 = math.tanh %8 : vector<16x32xf32>
    %10 = arith.truncf %9 : vector<16x32xf32> to vector<16x32xbf16>
    %c0_10 = arith.constant 0 : index
    %c0_11 = arith.constant 0 : index
    %11 = vector.load %arg5[%c0_10, %c0_11] : memref<32x32xbf16, #tpu.memory_space<vmem>>, vector<32x32xbf16>
    %cst_12 = arith.constant dense<0.000000e+00> : vector<16x32xf32>
    %12 = tpu.matmul %10, %11, %cst_12 {dimension_numbers = #tpu.dot_dimension_numbers<[1], [0], [0], [1], [0, 0, 1, 1], [], []>} : vector<16x32xbf16>, vector<32x32xbf16>, vector<16x32xf32> -> vector<16x32xf32>
    %c0_13 = arith.constant 0 : index
    %c0_14 = arith.constant 0 : index
    %13 = vector.load %arg6[%c0_13, %c0_14] : memref<1x32xf32, #tpu.memory_space<vmem>>, vector<1x32xf32>
    %14 = vector.broadcast %13 : vector<1x32xf32> to vector<16x32xf32>
    %15 = arith.addf %12, %14 : vector<16x32xf32>
    %16 = math.tanh %15 : vector<16x32xf32>
    %17 = arith.truncf %16 : vector<16x32xf32> to vector<16x32xbf16>
    %c0_15 = arith.constant 0 : index
    %c0_16 = arith.constant 0 : index
    %18 = vector.load %arg7[%c0_15, %c0_16] : memref<32x128xbf16, #tpu.memory_space<vmem>>, vector<32x128xbf16>
    %cst_17 = arith.constant dense<0.000000e+00> : vector<16x128xf32>
    %19 = tpu.matmul %17, %18, %cst_17 {dimension_numbers = #tpu.dot_dimension_numbers<[1], [0], [0], [1], [0, 0, 1, 1], [], []>} : vector<16x32xbf16>, vector<32x128xbf16>, vector<16x128xf32> -> vector<16x128xf32>
    %c0_18 = arith.constant 0 : index
    %c0_19 = arith.constant 0 : index
    %20 = vector.load %arg8[%c0_18, %c0_19] : memref<1x128xf32, #tpu.memory_space<vmem>>, vector<1x128xf32>
    %21 = vector.broadcast %20 : vector<1x128xf32> to vector<16x128xf32>
    %22 = arith.addf %19, %21 : vector<16x128xf32>
    %c0_20 = arith.constant 0 : index
    %c0_21 = arith.constant 0 : index
    %23 = vector.load %arg9[%c0_20, %c0_21] : memref<16x128xf32, #tpu.memory_space<vmem>>, vector<16x128xf32>
    tpu.vector_store %arg9[%c0_20, %c0_21], %22 {strides = array<i32>} : memref<16x128xf32, #tpu.memory_space<vmem>>, vector<16x128xf32>,
    return
  }
  func.func @transform_1(%arg0: i32, %arg1: memref<16xi32, #tpu.memory_space<smem>>) -> (i32, i32) {
    %c0_i32 = arith.constant 0 : i32
    %c0_i32_0 = arith.constant 0 : i32
    %c0_i32_1 = arith.constant 0 : i32
    return %c0_i32, %c0_i32_0 : i32, i32
  }
  func.func @transform_2(%arg0: i32, %arg1: memref<16xi32, #tpu.memory_space<smem>>) -> (i32, i32) {
    %c0_i32 = arith.constant 0 : i32
    %c0_i32_0 = arith.constant 0 : i32
    %c0_i32_1 = arith.constant 0 : i32
    return %c0_i32, %c0_i32_0 : i32, i32
  }
  func.func @transform_3(%arg0: i32, %arg1: memref<16xi32, #tpu.memory_space<smem>>) -> (i32, i32) {
    %c0_i32 = arith.constant 0 : i32
    %c0_i32_0 = arith.constant 0 : i32
    %c0_i32_1 = arith.constant 0 : i32
    return %c0_i32, %c0_i32_0 : i32, i32
  }
  func.func @transform_4(%arg0: i32, %arg1: memref<16xi32, #tpu.memory_space<smem>>) -> (i32, i32) {
    %c0_i32 = arith.constant 0 : i32
    %c0_i32_0 = arith.constant 0 : i32
    %c0_i32_1 = arith.constant 0 : i32
    return %c0_i32, %c0_i32_0 : i32, i32
  }
  func.func @transform_5(%arg0: i32, %arg1: memref<16xi32, #tpu.memory_space<smem>>) -> (i32, i32) {
    %c0_i32 = arith.constant 0 : i32
    %c0_i32_0 = arith.constant 0 : i32
    %c0_i32_1 = arith.constant 0 : i32
    return %c0_i32, %c0_i32_0 : i32, i32
  }
  func.func @transform_6(%arg0: i32, %arg1: memref<16xi32, #tpu.memory_space<smem>>) -> (i32, i32) {
    %c0_i32 = arith.constant 0 : i32
    %c0_i32_0 = arith.constant 0 : i32
    %c0_i32_1 = arith.constant 0 : i32
    return %c0_i32, %c0_i32_0 : i32, i32
  }
  func.func @transform_7(%arg0: i32, %arg1: memref<16xi32, #tpu.memory_space<smem>>) -> (i32, i32) {
    %c0_i32 = arith.constant 0 : i32
    %c0_i32_0 = arith.constant 0 : i32
    return %arg0, %c0_i32 : i32, i32
  }
}

</mosaic_0001>

<bundles_post_ra>
// kernel: tpu_custom_call.1
= control target key start
LH: loop header
LB: loop body
LE: loop exit
PB: predicated region body
PF: predicated region fallthrough
CT: control target
= control target key end

     0   :  { %s375_s30 = smov [#allocation5]   ;;  %s463_s0 = inlined_call_operand.vmem [shape: s32[16], index: 0, kind: input, shape index: {}]   ;;  %s464_s1 = inlined_call_operand.vmem [shape: f32[100,32], index: 1, kind: input, shape index: {}]   ;;  %s465_s2 = inlined_call_operand.vmem [shape: bf16[32,32], index: 2, kind: input, shape index: {}]   ;;  %s466_s3 = inlined_call_operand.vmem [shape: f32[1,32], index: 3, kind: input, shape index: {}]   ;;  %s467_s4 = inlined_call_operand.vmem [shape: bf16[32,32], index: 4, kind: input, shape index: {}]   ;;  %s468_s5 = inlined_call_operand.vmem [shape: f32[1,32], index: 5, kind: input, shape index: {}]   ;;  %s469_s6 = inlined_call_operand.vmem [shape: bf16[32,128], index: 6, kind: input, shape index: {}]   ;;  %s470_s7 = inlined_call_operand.vmem [shape: f32[1,128], index: 7, kind: input, shape index: {}]   ;;  %s471_s8 = inlined_call_operand.hbm [shape: f32[16,128], index: 8, kind: output, shape index: {}]  }
   0x1   :  { %s14_s29 = sshll.u32 %s463_s0, 4  ;;  %s15_s29 = int_to_ptr.vmem [resolvable:$true] %s14_s29 }
   0x2   :  { %17 = dma.vmem_to_smem %s15_s29, 16, %s375_s30, [#allocation4] }
   0x3   :  { %361 = dma.done.wait [#allocation4], 16 }
   0x4   :  { %362 = vsyncadd [#allocation4], 4294967280 }
   0x5   :  { %20 = sfence }
   0x6   :  { %21 = vsyncpa [#allocation7], 0  ;;  %s367_s9 = smov 0  }
   0x7 LB: > { %s43_s10 = sld [smem:[#allocation5 + %s369_s9]]  ;;  %s45_s14 = scalar_lea.vmem [#allocation2], %s369_s9  ;;  %s369_s9 = sphi %s367_s9, %s40_s9  }
   0xd   : > { %s44_s13 = scalar_lea.vmem %s464_s1, %s43_s10 }
   0xe   : > { %v60_v0 = vld [vmem:[%s44_s13] sm:$0x1] }
   0xf   : > { %61 = vst [vmem:[%s45_s14] sm:$0x1] %v60_v0 }
  0x10   : > { %79 = vsyncadd [#allocation3], 16  ;;  %s40_s9 = sadd.s32 1, %s369_s9  }
  0x11   : > { %p37_p0 = scmp.ge.s32.totalorder %s40_s9, 16  }
  0x12   :  { %s371_s0 = smov (%p37_p0), 0  }
  0x13   :  { %39 = sbr.rel (!%p37_p0) target bundleno = 7 (0x7), region = 94 }
  0x18 LB: > { %363 = dma.done.wait [#allocation3], 16  ;;  %s373_s0 = sphi %s371_s0, %s85_s0  }
  0x19   : > { %364 = vsyncadd [#allocation3], 4294967280  ;;  %s85_s0 = sadd.s32 1, %s373_s0  }
  0x1a   : > { %p82_p1 = scmp.ge.s32.totalorder %s85_s0, 16  }
  0x1b   :  { %v281_v1 = vld [vmem:[%s465_s2 + $0x8] sm:$0xff] (%p82_p1)  ;;  %v280_v2 = vld [vmem:[%s465_s2] sm:$0xff] (%p82_p1)  ;;  %vm112_vm0 = vcmask (%p82_p1), 261120   ;;  %s218_s9 = sshll.u32 (%p82_p1), %s471_s8, 4  ;;  %s377_s10 = smov (%p82_p1), 128   ;;  %s219_s9 = int_to_ptr.hbm [resolvable:$true] %s218_s9 }
  0x1c   :  { %84 = sbr.rel (!%p82_p1) target bundleno = 24 (0x18), region = 105  ;;  %v89_v3 = vld [vmem:[#allocation2] sm:$0xff] (%p82_p1)  ;;  %122 = vmatpush.bf16.msra.mxu0 (%p82_p1), %v281_v1  ;;  %v90_v4 = vld [vmem:[#allocation2 + $0x8] sm:$0xff] (%p82_p1)  ;;  %s378_s11 = smov (%p82_p1), 8  }
  0x1d   :  { %v91_v5 = vpack.c.bf16 (%p82_p1), %v90_v4, %v89_v3  ;;  %v283_v6 = vld [vmem:[%s467_s4 + $0x8] sm:$0xff] (%p82_p1)  ;;  %v282_v7 = vld [vmem:[%s467_s4] sm:$0xff] (%p82_p1) }
  0x1e   :  { %162 = vmatpush.bf16.msra.mxu1 (%p82_p1), %v283_v6  ;;  %v306_v9 = vld [vmem:[%s466_s3] ss:$0 sm:$0xff] (%p82_p1)  ;;  %v285_v16 = vld [vmem:[%s469_s6 + $0x8] sm:$0xff] (%p82_p1) }
  0x1f   :  { %202 = vmatpush.bf16.msra.mxu2 (%p82_p1), %v285_v16  ;;  %v284_v17 = vld [vmem:[%s469_s6] sm:$0xff] (%p82_p1)  ;;  %s376_s6 = smov (%p82_p1), [#allocation6]  }
  0x20   :  { %123 = vmatpush.bf16.msra.mxu0 (%p82_p1), %v280_v2  ;;  %v307_v19 = vld [vmem:[%s468_s5] ss:$0 sm:$0xff] (%p82_p1)  ;;  %s216_s29 = sshll.u32 (%p82_p1), %s376_s6, 4  ;;  %s217_s29 = int_to_ptr.vmem [resolvable:$true] %s216_s29 }
  0x21   :  { %v308_v26 = vld [vmem:[%s470_s7] ss:$0 sm:$0xff] }
  0x22   :  { %163 = vmatpush.bf16.msra.mxu1 %v282_v7 }
  0x23   :  { %260 = vmatmul.msk.bf16.vlgmr.msra.gmra.mxu0 %vm112_vm0, %v91_v5  ;;  %203 = vmatpush.bf16.msra.mxu2 %v284_v17 }
  0xa0   :  { %v125_v8 = vpop.f32.mrf.mxu0 }
  0xa1   :  { %v126_v10 = vadd.f32 %v306_v9, %v125_v8 }
  0xa3   :  { %309 = vtanh.f32 %v126_v10 }
  0xa8   :  { %v127_v11 = vpop.f32.mrf.mxu0 }
  0xa9   :  { %v128_v12 = vadd.f32 %v306_v9, %v127_v11  ;;  %v310_v13 = vpop.eup %309 }
  0xab   :  { %311 = vtanh.f32 %v128_v12 }
  0xb1   :  { %v312_v14 = vpop.eup %311 }
  0xb2   :  { %v132_v15 = vpack.c.bf16 %v312_v14, %v310_v13 }
  0xb4   :  { %269 = vmatmul.msk.bf16.vlgmr.msra.gmra.mxu1 %vm112_vm0, %v132_v15 }
 0x131   :  { %v165_v18 = vpop.f32.mrf.mxu1 }
 0x132   :  { %v166_v20 = vadd.f32 %v307_v19, %v165_v18 }
 0x134   :  { %313 = vtanh.f32 %v166_v20 }
 0x139   :  { %v167_v21 = vpop.f32.mrf.mxu1 }
 0x13a   :  { %v168_v22 = vadd.f32 %v307_v19, %v167_v21  ;;  %v314_v23 = vpop.eup %313 }
 0x13c   :  { %315 = vtanh.f32 %v168_v22 }
 0x142   :  { %v316_v24 = vpop.eup %315 }
 0x143   :  { %v172_v25 = vpack.c.bf16 %v316_v24, %v314_v23 }
 0x145   :  { %278 = vmatmul.msk.bf16.vlgmr.msra.gmra.mxu2 %vm112_vm0, %v172_v25 }
 0x1c8   :  { %v205_v27 = vpop.f32.mrf.mxu2 }
 0x1c9   :  { %v206_v28 = vadd.f32 %v308_v26, %v205_v27 }
 0x1cb   :  { %210 = vst [vmem:[#allocation6] sm:$0xff] %v206_v28 }
 0x1d0   :  { %v207_v29 = vpop.f32.mrf.mxu2 }
 0x1d1   :  { %v208_v30 = vadd.f32 %v308_v26, %v207_v29 }
 0x1d3   :  { %211 = vst [vmem:[#allocation6 + $0x8] sm:$0xff] %v208_v30 }
 0x1d4   :  { %224 = dma.vmem_to_hbm [thread:$0]  %s217_s29, 256, %s219_s9, [#allocation7], %s377_s10, %s377_s10, %s378_s11  }
 0x1d5   :  { %365 = dma.done.wait [#allocation7], 256  }
 0x1d6   :  { %366 = vsyncadd [#allocation7], 4294967040 }
 0x1d7   :  { %229 = vsyncpa [#allocation7], 1 }
 0x1d8   :  { %230 = vsyncmov [#allocation3] }
 0x1db   :  { %s231_s7 = vpop.sfrf %230 }
 0x1dc   :  { %p279_p2 = scmp.ne.s32.totalorder %s231_s7, 0 }
 0x1de   :  { %235 = shalt.err (%p279_p2)  }

// kernel: tpu_custom_call.1
= control target key start
LH: loop header
LB: loop body
LE: loop exit
PB: predicated region body
PF: predicated region fallthrough
CT: control target
= control target key end

     0   :  { %s375_s30 = smov [#allocation5]   ;;  %s463_s0 = inlined_call_operand.vmem [shape: s32[16], index: 0, kind: input, shape index: {}]   ;;  %s464_s1 = inlined_call_operand.vmem [shape: f32[100,32], index: 1, kind: input, shape index: {}]   ;;  %s465_s2 = inlined_call_operand.vmem [shape: bf16[32,32], index: 2, kind: input, shape index: {}]   ;;  %s466_s3 = inlined_call_operand.vmem [shape: f32[1,32], index: 3, kind: input, shape index: {}]   ;;  %s467_s4 = inlined_call_operand.vmem [shape: bf16[32,32], index: 4, kind: input, shape index: {}]   ;;  %s468_s5 = inlined_call_operand.vmem [shape: f32[1,32], index: 5, kind: input, shape index: {}]   ;;  %s469_s6 = inlined_call_operand.vmem [shape: bf16[32,128], index: 6, kind: input, shape index: {}]   ;;  %s470_s7 = inlined_call_operand.vmem [shape: f32[1,128], index: 7, kind: input, shape index: {}]   ;;  %s471_s8 = inlined_call_operand.hbm [shape: f32[16,128], index: 8, kind: output, shape index: {}]  }
   0x1   :  { %s14_s29 = sshll.u32 %s463_s0, 4  ;;  %s15_s29 = int_to_ptr.vmem [resolvable:$true] %s14_s29 }
   0x2   :  { %17 = dma.vmem_to_smem %s15_s29, 16, %s375_s30, [#allocation4] }
   0x3   :  { %361 = dma.done.wait [#allocation4], 16 }
   0x4   :  { %362 = vsyncadd [#allocation4], 4294967280 }
   0x5   :  { %20 = sfence }
   0x6   :  { %21 = vsyncpa [#allocation7], 0  ;;  %s367_s9 = smov 0  }
   0x7 LB: > { %s43_s10 = sld [smem:[#allocation5 + %s369_s9]]  ;;  %s45_s14 = scalar_lea.vmem [#allocation2], %s369_s9  ;;  %s369_s9 = sphi %s367_s9, %s40_s9  }
   0xd   : > { %s44_s13 = scalar_lea.vmem %s464_s1, %s43_s10 }
   0xe   : > { %v60_v0 = vld [vmem:[%s44_s13] sm:$0x1] }
   0xf   : > { %61 = vst [vmem:[%s45_s14] sm:$0x1] %v60_v0 }
  0x10   : > { %79 = vsyncadd [#allocation3], 16  ;;  %s40_s9 = sadd.s32 1, %s369_s9  }
  0x11   : > { %p37_p0 = scmp.ge.s32.totalorder %s40_s9, 16  }
  0x12   :  { %s371_s0 = smov (%p37_p0), 0  }
  0x13   :  { %39 = sbr.rel (!%p37_p0) target bundleno = 7 (0x7), region = 94 }
  0x18 LB: > { %363 = dma.done.wait [#allocation3], 16  ;;  %s373_s0 = sphi %s371_s0, %s85_s0  }
  0x19   : > { %364 = vsyncadd [#allocation3], 4294967280  ;;  %s85_s0 = sadd.s32 1, %s373_s0  }
  0x1a   : > { %p82_p1 = scmp.ge.s32.totalorder %s85_s0, 16  }
  0x1b   :  { %v281_v1 = vld [vmem:[%s465_s2 + $0x8] sm:$0xff] (%p82_p1)  ;;  %v280_v2 = vld [vmem:[%s465_s2] sm:$0xff] (%p82_p1)  ;;  %vm112_vm0 = vcmask (%p82_p1), 261120   ;;  %s218_s9 = sshll.u32 (%p82_p1), %s471_s8, 4  ;;  %s377_s10 = smov (%p82_p1), 128   ;;  %s219_s9 = int_to_ptr.hbm [resolvable:$true] %s218_s9 }
  0x1c   :  { %84 = sbr.rel (!%p82_p1) target bundleno = 24 (0x18), region = 105  ;;  %v89_v3 = vld [vmem:[#allocation2] sm:$0xff] (%p82_p1)  ;;  %122 = vmatpush.bf16.msra.mxu0 (%p82_p1), %v281_v1  ;;  %v90_v4 = vld [vmem:[#allocation2 + $0x8] sm:$0xff] (%p82_p1)  ;;  %s378_s11 = smov (%p82_p1), 8  }
  0x1d   :  { %v91_v5 = vpack.c.bf16 (%p82_p1), %v90_v4, %v89_v3  ;;  %v283_v6 = vld [vmem:[%s467_s4 + $0x8] sm:$0xff] (%p82_p1)  ;;  %v282_v7 = vld [vmem:[%s467_s4] sm:$0xff] (%p82_p1) }
  0x1e   :  { %162 = vmatpush.bf16.msra.mxu1 (%p82_p1), %v283_v6  ;;  %v306_v9 = vld [vmem:[%s466_s3] ss:$0 sm:$0xff] (%p82_p1)  ;;  %v285_v16 = vld [vmem:[%s469_s6 + $0x8] sm:$0xff] (%p82_p1) }
  0x1f   :  { %202 = vmatpush.bf16.msra.mxu2 (%p82_p1), %v285_v16  ;;  %v284_v17 = vld [vmem:[%s469_s6] sm:$0xff] (%p82_p1)  ;;  %s376_s6 = smov (%p82_p1), [#allocation6]  }
  0x20   :  { %123 = vmatpush.bf16.msra.mxu0 (%p82_p1), %v280_v2  ;;  %v307_v19 = vld [vmem:[%s468_s5] ss:$0 sm:$0xff] (%p82_p1)  ;;  %s216_s29 = sshll.u32 (%p82_p1), %s376_s6, 4  ;;  %s217_s29 = int_to_ptr.vmem [resolvable:$true] %s216_s29 }
  0x21   :  { %v308_v26 = vld [vmem:[%s470_s7] ss:$0 sm:$0xff] }
  0x22   :  { %163 = vmatpush.bf16.msra.mxu1 %v282_v7 }
  0x23   :  { %260 = vmatmul.msk.bf16.vlgmr.msra.gmra.mxu0 %vm112_vm0, %v91_v5  ;;  %203 = vmatpush.bf16.msra.mxu2 %v284_v17 }
  0xa0   :  { %v125_v8 = vpop.f32.mrf.mxu0 }
  0xa1   :  { %v126_v10 = vadd.f32 %v306_v9, %v125_v8 }
  0xa3   :  { %309 = vtanh.f32 %v126_v10 }
  0xa8   :  { %v127_v11 = vpop.f32.mrf.mxu0 }
  0xa9   :  { %v128_v12 = vadd.f32 %v306_v9, %v127_v11  ;;  %v310_v13 = vpop.eup %309 }
  0xab   :  { %311 = vtanh.f32 %v128_v12 }
  0xb1   :  { %v312_v14 = vpop.eup %311 }
  0xb2   :  { %v132_v15 = vpack.c.bf16 %v312_v14, %v310_v13 }
  0xb4   :  { %269 = vmatmul.msk.bf16.vlgmr.msra.gmra.mxu1 %vm112_vm0, %v132_v15 }
 0x131   :  { %v165_v18 = vpop.f32.mrf.mxu1 }
 0x132   :  { %v166_v20 = vadd.f32 %v307_v19, %v165_v18 }
 0x134   :  { %313 = vtanh.f32 %v166_v20 }
 0x139   :  { %v167_v21 = vpop.f32.mrf.mxu1 }
 0x13a   :  { %v168_v22 = vadd.f32 %v307_v19, %v167_v21  ;;  %v314_v23 = vpop.eup %313 }
 0x13c   :  { %315 = vtanh.f32 %v168_v22 }
 0x142   :  { %v316_v24 = vpop.eup %315 }
 0x143   :  { %v172_v25 = vpack.c.bf16 %v316_v24, %v314_v23 }
 0x145   :  { %278 = vmatmul.msk.bf16.vlgmr.msra.gmra.mxu2 %vm112_vm0, %v172_v25 }
 0x1c8   :  { %v205_v27 = vpop.f32.mrf.mxu2 }
 0x1c9   :  { %v206_v28 = vadd.f32 %v308_v26, %v205_v27 }
 0x1cb   :  { %210 = vst [vmem:[#allocation6] sm:$0xff] %v206_v28 }
 0x1d0   :  { %v207_v29 = vpop.f32.mrf.mxu2 }
 0x1d1   :  { %v208_v30 = vadd.f32 %v308_v26, %v207_v29 }
 0x1d3   :  { %211 = vst [vmem:[#allocation6 + $0x8] sm:$0xff] %v208_v30 }
 0x1d4   :  { %224 = dma.vmem_to_hbm [thread:$0]  %s217_s29, 256, %s219_s9, [#allocation7], %s377_s10, %s377_s10, %s378_s11  }
 0x1d5   :  { %365 = dma.done.wait [#allocation7], 256  }
 0x1d6   :  { %366 = vsyncadd [#allocation7], 4294967040 }
 0x1d7   :  { %229 = vsyncpa [#allocation7], 1 }
 0x1d8   :  { %230 = vsyncmov [#allocation3] }
 0x1db   :  { %s231_s7 = vpop.sfrf %230 }
 0x1dc   :  { %p279_p2 = scmp.ne.s32.totalorder %s231_s7, 0 }
 0x1de   :  { %235 = shalt.err (%p279_p2)  }

</bundles_post_ra>
